<compile_context>
chip_gen: v7x
topology: tpu7x:2x2x1
jax: 0.10.0
libtpu: 0.0.40
codegen_flags: <defaults>
</compile_context>

<pallas_src>
import functools
import math

import jax
import jax.numpy as jnp
from jax.experimental import pallas as pl
from jax.experimental.pallas import tpu as pltpu


_VMEM_LIMIT = 48 * 1024 * 1024   # <= ~48 MiB: safe on v7x (64 MiB/TC), fine on v5e/v6e
_TM_MATMUL = 256                 # row tile for weight-resident matmuls (512 ok on v5e/v6e)
_TM_ELEM = 512                   # row tile for memory-bound elementwise (layernorm)


def _pick_tile(dim, target, align):
    """Largest multiple of `align` <= target that divides dim (else full dim)."""
    if dim <= target:
        return dim
    t = (target // align) * align
    while t >= align:
        if dim % t == 0:
            return t
        t -= align
    return dim


# ----------------------------- Pallas kernels ------------------------------

def _matmul_bias_kernel(x_ref, w_ref, b_ref, o_ref, *, activation):
    """out = act(x @ W + b) with the whole (K, N) weight resident in VMEM."""
    y = jnp.dot(x_ref[...], w_ref[...], preferred_element_type=jnp.float32)
    y = y + b_ref[...].astype(jnp.float32)
    if activation == "gelu":
        # TODO(synk): BERT reference uses exact erf-GELU; tanh approx here.
        y = jax.nn.gelu(y, approximate=True)
    o_ref[...] = y.astype(o_ref.dtype)


def _matmul_residual_ln_kernel(x_ref, w_ref, b_ref, r_ref, g_ref, beta_ref,
                               o_ref):
    """out = LayerNorm(x @ W + b + residual), weight resident, no K grid axis."""
    y = jnp.dot(x_ref[...], w_ref[...], preferred_element_type=jnp.float32)
    y = (y + b_ref[...].astype(jnp.float32) + r_ref[...].astype(jnp.float32))
    mean = jnp.mean(y, axis=-1, keepdims=True)
    var = jnp.mean(jnp.square(y - mean), axis=-1, keepdims=True)
    yn = (y - mean) * jax.lax.rsqrt(var + 1e-12)
    o_ref[...] = (yn * g_ref[...].astype(jnp.float32)
                  + beta_ref[...].astype(jnp.float32)).astype(o_ref.dtype)


def _layernorm_kernel(x_ref, g_ref, b_ref, o_ref):
    x = x_ref[...].astype(jnp.float32)
    mean = jnp.mean(x, axis=-1, keepdims=True)
    var = jnp.mean(jnp.square(x - mean), axis=-1, keepdims=True)
    y = (x - mean) * jax.lax.rsqrt(var + 1e-12)
    o_ref[...] = (y * g_ref[...].astype(jnp.float32)
                  + b_ref[...].astype(jnp.float32)).astype(o_ref.dtype)


def _attention_group_kernel(q_ref, k_ref, v_ref, m_ref, o_ref, *, dh, scale):
    """One (batch, head-group) tile: q/k/v_ref are (1, S, GW) bf16 slices of
    the fused QKV slab (GW = heads_per_group * dh, a multiple of 128 lanes)."""
    mask = m_ref[0]                               # (1, S) additive f32
    heads = q_ref.shape[2] // dh
    for h in range(heads):                        # unrolled; 1-2 heads/group
        lo = h * dh
        q = q_ref[0, :, lo:lo + dh] * scale       # scale folded into bf16 q
        k = k_ref[0, :, lo:lo + dh]
        v = v_ref[0, :, lo:lo + dh]
        # Contract last dims of q/k directly (no materialized k.T).
        s = jax.lax.dot_general(q, k, (((1,), (1,)), ((), ())),
                                preferred_element_type=jnp.float32)
        s = s + mask
        s = s - jnp.max(s, axis=-1, keepdims=True)
        p = jnp.exp(s)
        # softmax normalization on the (otherwise idle) EUP slot.
        p = p * pl.reciprocal(jnp.sum(p, axis=-1, keepdims=True), approx=True)
        # Per-head store straight into the output block (no concat, one head
        # of f32 partials live at a time).
        o_ref[0, :, lo:lo + dh] = jnp.dot(
            p.astype(v.dtype), v,
            preferred_element_type=jnp.float32).astype(o_ref.dtype)


def _attention_full_kernel(qkv_ref, m_ref, o_ref, *, num_heads, scale):
    """Fallback for head dims that do not tile into 128-lane groups.
    qkv_ref: (1, S, 3H) bf16 fused [Q | K | V]."""
    H = qkv_ref.shape[2] // 3
    dh = H // num_heads
    mask = m_ref[0]
    for h in range(num_heads):
        q = qkv_ref[0, :, h * dh:(h + 1) * dh] * scale
        k = qkv_ref[0, :, H + h * dh:H + (h + 1) * dh]
        v = qkv_ref[0, :, 2 * H + h * dh:2 * H + (h + 1) * dh]
        s = jax.lax.dot_general(q, k, (((1,), (1,)), ((), ())),
                                preferred_element_type=jnp.float32)
        s = s + mask
        s = s - jnp.max(s, axis=-1, keepdims=True)
        p = jnp.exp(s)
        p = p * pl.reciprocal(jnp.sum(p, axis=-1, keepdims=True), approx=True)
        o_ref[0, :, h * dh:(h + 1) * dh] = jnp.dot(
            p.astype(v.dtype), v,
            preferred_element_type=jnp.float32).astype(o_ref.dtype)


# ------------------------------ thin wrappers -------------------------------

def linear(x2d, w, b, activation=None):
    """y = act(x @ W + b).  Weight kept fully VMEM-resident (one DMA/call)."""
    M, K = x2d.shape
    N = w.shape[1]
    tm = _pick_tile(M, _TM_MATMUL, 8)
    kernel = functools.partial(_matmul_bias_kernel, activation=activation)
    return pl.pallas_call(
        kernel,
        out_shape=jax.ShapeDtypeStruct((M, N), x2d.dtype),
        grid=(M // tm,),
        in_specs=[pl.BlockSpec((tm, K), lambda i: (i, 0)),
                  pl.BlockSpec((K, N), lambda i: (0, 0)),   # resident weight
                  pl.BlockSpec((1, N), lambda i: (0, 0))],
        out_specs=pl.BlockSpec((tm, N), lambda i: (i, 0)),
        compiler_params=pltpu.CompilerParams(
            dimension_semantics=("parallel",),
            vmem_limit_bytes=_VMEM_LIMIT),
    )(x2d, w, b)


def linear_residual_layernorm(x2d, w, b, residual, gamma, beta):
    """LayerNorm(x @ W + b + residual), fused, weight VMEM-resident."""
    M, K = x2d.shape
    N = w.shape[1]
    tm = _pick_tile(M, _TM_MATMUL, 8)
    return pl.pallas_call(
        _matmul_residual_ln_kernel,
        out_shape=jax.ShapeDtypeStruct((M, N), residual.dtype),
        grid=(M // tm,),
        in_specs=[pl.BlockSpec((tm, K), lambda i: (i, 0)),
                  pl.BlockSpec((K, N), lambda i: (0, 0)),   # resident weight
                  pl.BlockSpec((1, N), lambda i: (0, 0)),
                  pl.BlockSpec((tm, N), lambda i: (i, 0)),
                  pl.BlockSpec((1, N), lambda i: (0, 0)),
                  pl.BlockSpec((1, N), lambda i: (0, 0))],
        out_specs=pl.BlockSpec((tm, N), lambda i: (i, 0)),
        compiler_params=pltpu.CompilerParams(
            dimension_semantics=("parallel",),
            vmem_limit_bytes=_VMEM_LIMIT),
    )(x2d, w, b, residual, gamma, beta)


def layernorm(x2d, g, b, out_dtype=None):
    M, H = x2d.shape
    tm = _pick_tile(M, _TM_ELEM, 8)
    return pl.pallas_call(
        _layernorm_kernel,
        out_shape=jax.ShapeDtypeStruct((M, H), out_dtype or x2d.dtype),
        grid=(M // tm,),
        in_specs=[pl.BlockSpec((tm, H), lambda i: (i, 0)),
                  pl.BlockSpec((1, H), lambda i: (0, 0)),
                  pl.BlockSpec((1, H), lambda i: (0, 0))],
        out_specs=pl.BlockSpec((tm, H), lambda i: (i, 0)),
        compiler_params=pltpu.CompilerParams(
            dimension_semantics=("parallel",),
            vmem_limit_bytes=_VMEM_LIMIT),
    )(x2d, g, b)


def attention(qkv, mask3, num_heads):
    """Self-attention over the fused QKV slab.

    qkv: (B, S, 3H) bf16, mask3: (B, 1, S) additive f32.
    Preferred path: (batch, head-group) grid with 128-lane aligned group
    blocks carved out of the fused slab (the slab is passed 3x with Q/K/V
    offset index maps).  Fallback: whole-slab per-batch kernel.
    """
    B, S, H3 = qkv.shape
    H = H3 // 3
    dh = H // num_heads
    scale = 1.0 / math.sqrt(dh)

    if H % 128 == 0 and dh <= 128 and 128 % dh == 0:
        gw = 128                                  # lane width per head group
        n_groups = H // gw
        kern = functools.partial(_attention_group_kernel, dh=dh, scale=scale)
        return pl.pallas_call(
            kern,
            out_shape=jax.ShapeDtypeStruct((B, S, H), qkv.dtype),
            grid=(B, n_groups),
            in_specs=[
                pl.BlockSpec((1, S, gw), lambda b, g: (b, 0, g)),
                pl.BlockSpec((1, S, gw), lambda b, g: (b, 0, n_groups + g)),
                pl.BlockSpec((1, S, gw), lambda b, g: (b, 0, 2 * n_groups + g)),
                pl.BlockSpec((1, 1, S), lambda b, g: (b, 0, 0)),
            ],
            out_specs=pl.BlockSpec((1, S, gw), lambda b, g: (b, 0, g)),
            compiler_params=pltpu.CompilerParams(
                dimension_semantics=("parallel", "parallel"),
                vmem_limit_bytes=_VMEM_LIMIT),
        )(qkv, qkv, qkv, mask3)

    # Fallback (odd head widths / tiny hidden sizes): whole slab per batch.
    kern = functools.partial(_attention_full_kernel, num_heads=num_heads,
                             scale=scale)
    return pl.pallas_call(
        kern,
        out_shape=jax.ShapeDtypeStruct((B, S, H), qkv.dtype),
        grid=(B,),
        in_specs=[pl.BlockSpec((1, S, H3), lambda b: (b, 0, 0)),
                  pl.BlockSpec((1, 1, S), lambda b: (b, 0, 0))],
        out_specs=pl.BlockSpec((1, S, H), lambda b: (b, 0, 0)),
        compiler_params=pltpu.CompilerParams(
            dimension_semantics=("parallel",),
            vmem_limit_bytes=_VMEM_LIMIT),
    )(qkv, mask3)


# ------------------------- parameter initialization -------------------------

def init_params(key, cfg):
    """Deterministic synthetic BERT + QA-head parameters (weights in bf16)."""
    H = cfg["hidden_size"]
    I = cfg["intermediate_size"]
    rng = cfg["initializer_range"]
    bf16 = jnp.bfloat16

    def nrm(k, shape, dtype=jnp.float32):
        return (jax.random.normal(k, shape, jnp.float32) * rng).astype(dtype)

    keys = iter(jax.random.split(key, 64))
    word_emb = nrm(next(keys), (cfg["vocab_size"], H))
    word_emb = word_emb.at[cfg["pad_idx"]].set(0.0)   # nn.Embedding(padding_idx)
    params = {
        "num_heads": cfg["num_heads"],
        "word_emb": word_emb,
        "pos_emb": nrm(next(keys), (cfg["max_position"], H)),
        "type_emb": nrm(next(keys), (cfg["type_vocab_size"], H)),
        "emb_ln_g": jnp.ones((1, H), jnp.float32),
        "emb_ln_b": jnp.zeros((1, H), jnp.float32),
        "layers": [],
    }
    for _ in range(cfg["num_layers"]):
        wq = nrm(next(keys), (H, H), bf16)
        wk = nrm(next(keys), (H, H), bf16)
        wv = nrm(next(keys), (H, H), bf16)
        layer = {
            "wqkv": jnp.concatenate([wq, wk, wv], axis=1),   # fused (H, 3H)
            "bqkv": jnp.zeros((1, 3 * H), jnp.float32),
            "wo": nrm(next(keys), (H, H), bf16),
            "bo": jnp.zeros((1, H), jnp.float32),
            "ln1_g": jnp.ones((1, H), jnp.float32),
            "ln1_b": jnp.zeros((1, H), jnp.float32),
            "w1": nrm(next(keys), (H, I), bf16),
            "b1": jnp.zeros((1, I), jnp.float32),
            "w2": nrm(next(keys), (I, H), bf16),
            "b2": jnp.zeros((1, H), jnp.float32),
            "ln2_g": jnp.ones((1, H), jnp.float32),
            "ln2_b": jnp.zeros((1, H), jnp.float32),
        }
        params["layers"].append(layer)
    # qa_outputs: weight = fmod(randn, initializer_range), bias = zeros
    qa_w = jnp.fmod(jax.random.normal(next(keys), (cfg["num_labels"], H),
                                      jnp.float32), rng)
    params["qa_w"] = qa_w.T                           # stored as (H, num_labels)
    params["qa_b"] = jnp.zeros((cfg["num_labels"],), jnp.float32)
    return params


# ------------------------------- forward pass --------------------------------

def question_respondent_forward(params, input_ids, segment_ids, input_mask,
                                position_ids):
    B, S = input_ids.shape
    H = params["word_emb"].shape[1]
    nH = params["num_heads"]

    # embeddings (gathers are XLA glue), layernorm in Pallas -> bf16 activations
    emb = (jnp.take(params["word_emb"], input_ids, axis=0)
           + jnp.take(params["pos_emb"], position_ids, axis=0)
           + jnp.take(params["type_emb"], segment_ids, axis=0))
    x = layernorm(emb.reshape(B * S, H), params["emb_ln_g"],
                  params["emb_ln_b"], out_dtype=jnp.bfloat16)

    # BERT extended attention mask: (1 - mask) * -10000, shape (B, 1, S)
    attn_mask = ((1.0 - input_mask.astype(jnp.float32)) * -10000.0
                 ).reshape(B, 1, S)

    for layer in params["layers"]:
        qkv = linear(x, layer["wqkv"], layer["bqkv"])              # (B*S, 3H)
        ctx = attention(qkv.reshape(B, S, 3 * H), attn_mask, nH)   # (B, S, H)
        # TODO(synk): residual is carried in bf16 (reference adds in f32);
        # small drift over many layers.
        x = linear_residual_layernorm(ctx.reshape(B * S, H), layer["wo"],
                                      layer["bo"], x,
                                      layer["ln1_g"], layer["ln1_b"])
        inter = linear(x, layer["w1"], layer["b1"], activation="gelu")
        x = linear_residual_layernorm(inter, layer["w2"], layer["b2"], x,
                                      layer["ln2_g"], layer["ln2_b"])

    # QA head (num_labels=2): negligible FLOPs, <128-lane output — plain XLA.
    logits = (jnp.dot(x.astype(jnp.float32), params["qa_w"])
              + params["qa_b"]).reshape(B, S, -1)
    start_logits = logits[..., 0]
    end_logits = logits[..., 1]
    return start_logits, end_logits


# ---------------------------------- main -------------------------------------

if __name__ == "__main__":
    # Small shapes, chosen so the 128-lane head-group attention path and the
    # weight-resident linears are exercised (hidden=128, dh=64).
    cfg = dict(
        vocab_size=100,
        hidden_size=128,
        num_heads=2,
        num_layers=2,
        intermediate_size=256,
        max_position=64,
        type_vocab_size=2,
        initializer_range=0.02,
        num_labels=2,
        pad_idx=0,
    )
    B, S = 2, 8

    key = jax.random.PRNGKey(0)
    kp, ki, ks = jax.random.split(key, 3)
    params = init_params(kp, cfg)

    input_ids = jax.random.randint(ki, (B, S), 1, cfg["vocab_size"], jnp.int32)
    segment_ids = jax.random.randint(ks, (B, S), 0, 2, jnp.int32)
    input_mask = jnp.ones((B, S), jnp.int32).at[:, S - 2:].set(0)  # pad last 2
    position_ids = jnp.broadcast_to(jnp.arange(S, dtype=jnp.int32), (B, S))

    start_logits, end_logits = question_respondent_forward(
        params, input_ids, segment_ids, input_mask, position_ids)
    jax.block_until_ready((start_logits, end_logits))

    assert start_logits.shape == (B, S) and end_logits.shape == (B, S)
    print("KERNEL_OK")
</pallas_src>

<mosaic_0001>
module attributes {stable_mosaic.version = 11 : i64} {
  func.func @_layernorm_kernel(%arg0: i32, %arg1: memref<16x128xf32, #tpu.memory_space<vmem>>, %arg2: memref<1x128xf32, #tpu.memory_space<vmem>>, %arg3: memref<1x128xf32, #tpu.memory_space<vmem>>, %arg4: memref<16x128xbf16, #tpu.memory_space<vmem>>) attributes {dimension_semantics = [#tpu.dimension_semantics<parallel>], iteration_bounds = array<i64: 1>, scalar_prefetch = 0 : i64, scratch_operands = 0 : i64, tpu.core_type = #tpu.core_type<tc>, window_params = [{transform_indices = @transform_0, window_bounds = array<i64: 16, 128>}, {pipeline_mode = #tpu.pipeline_mode<synchronous>, transform_indices = @transform_1, window_bounds = array<i64: 1, 128>}, {pipeline_mode = #tpu.pipeline_mode<synchronous>, transform_indices = @transform_2, window_bounds = array<i64: 1, 128>}, {transform_indices = @transform_3, window_bounds = array<i64: 16, 128>}]} {
    %c0 = arith.constant 0 : index
    %c0_0 = arith.constant 0 : index
    %0 = vector.load %arg1[%c0, %c0_0] : memref<16x128xf32, #tpu.memory_space<vmem>>, vector<16x128xf32>
    %cst = arith.constant dense<0.000000e+00> : vector<16xf32>
    %1 = vector.multi_reduction <add>, %0, %cst [1] : vector<16x128xf32> to vector<16xf32>
    %2 = vector.shape_cast %1 : vector<16xf32> to vector<16x1xf32>
    %cst_1 = arith.constant 1.280000e+02 : f32
    %3 = vector.broadcast %cst_1 : f32 to vector<16x1xf32>
    %4 = arith.divf %2, %3 : vector<16x1xf32>
    %5 = vector.broadcast %4 : vector<16x1xf32> to vector<16x128xf32>
    %6 = arith.subf %0, %5 : vector<16x128xf32>
    %7 = arith.mulf %6, %6 : vector<16x128xf32>
    %cst_2 = arith.constant dense<0.000000e+00> : vector<16xf32>
    %8 = vector.multi_reduction <add>, %7, %cst_2 [1] : vector<16x128xf32> to vector<16xf32>
    %9 = vector.shape_cast %8 : vector<16xf32> to vector<16x1xf32>
    %cst_3 = arith.constant 1.280000e+02 : f32
    %10 = vector.broadcast %cst_3 : f32 to vector<16x1xf32>
    %11 = arith.divf %9, %10 : vector<16x1xf32>
    %12 = vector.broadcast %4 : vector<16x1xf32> to vector<16x128xf32>
    %13 = arith.subf %0, %12 : vector<16x128xf32>
    %cst_4 = arith.constant 9.99999996E-13 : f32
    %14 = vector.broadcast %cst_4 : f32 to vector<16x1xf32>
    %15 = arith.addf %11, %14 : vector<16x1xf32>
    %16 = math.rsqrt %15 : vector<16x1xf32>
    %17 = vector.broadcast %16 : vector<16x1xf32> to vector<16x128xf32>
    %18 = arith.mulf %13, %17 : vector<16x128xf32>
    %c0_5 = arith.constant 0 : index
    %c0_6 = arith.constant 0 : index
    %19 = vector.load %arg2[%c0_5, %c0_6] : memref<1x128xf32, #tpu.memory_space<vmem>>, vector<1x128xf32>
    %20 = vector.broadcast %19 : vector<1x128xf32> to vector<16x128xf32>
    %21 = arith.mulf %18, %20 : vector<16x128xf32>
    %c0_7 = arith.constant 0 : index
    %c0_8 = arith.constant 0 : index
    %22 = vector.load %arg3[%c0_7, %c0_8] : memref<1x128xf32, #tpu.memory_space<vmem>>, vector<1x128xf32>
    %23 = vector.broadcast %22 : vector<1x128xf32> to vector<16x128xf32>
    %24 = arith.addf %21, %23 : vector<16x128xf32>
    %25 = arith.truncf %24 : vector<16x128xf32> to vector<16x128xbf16>
    %c0_9 = arith.constant 0 : index
    %c0_10 = arith.constant 0 : index
    %26 = vector.load %arg4[%c0_9, %c0_10] : memref<16x128xbf16, #tpu.memory_space<vmem>>, vector<16x128xbf16>
    tpu.vector_store %arg4[%c0_9, %c0_10], %25 {strides = array<i32>} : memref<16x128xbf16, #tpu.memory_space<vmem>>, vector<16x128xbf16>,
    return
  }
  func.func @transform_0(%arg0: i32) -> (i32, i32) {
    %c0_i32 = arith.constant 0 : i32
    %c0_i32_0 = arith.constant 0 : i32
    return %arg0, %c0_i32 : i32, i32
  }
  func.func @transform_1(%arg0: i32) -> (i32, i32) {
    %c0_i32 = arith.constant 0 : i32
    %c0_i32_0 = arith.constant 0 : i32
    %c0_i32_1 = arith.constant 0 : i32
    return %c0_i32, %c0_i32_0 : i32, i32
  }
  func.func @transform_2(%arg0: i32) -> (i32, i32) {
    %c0_i32 = arith.constant 0 : i32
    %c0_i32_0 = arith.constant 0 : i32
    %c0_i32_1 = arith.constant 0 : i32
    return %c0_i32, %c0_i32_0 : i32, i32
  }
  func.func @transform_3(%arg0: i32) -> (i32, i32) {
    %c0_i32 = arith.constant 0 : i32
    %c0_i32_0 = arith.constant 0 : i32
    return %arg0, %c0_i32 : i32, i32
  }
}

</mosaic_0001>

<bundles_post_ra>
// kernel: tpu_custom_call.1
= control target key start
LH: loop header
LB: loop body
LE: loop exit
PB: predicated region body
PF: predicated region fallthrough
CT: control target
= control target key end

     0   :  { %8 = vsyncpa [#allocation3], 0  ;;  %s224_s0 = inlined_call_operand.hbm [shape: f32[16,128], index: 0, kind: input, shape index: {}]   ;;  %s225_s1 = inlined_call_operand.vmem [shape: f32[1,128], index: 1, kind: input, shape index: {}]   ;;  %s226_s2 = inlined_call_operand.vmem [shape: f32[1,128], index: 2, kind: input, shape index: {}]   ;;  %s227_s3 = inlined_call_operand.hbm [shape: bf16[16,128], index: 3, kind: output, shape index: {}]  }
   0x1   :  { %9 = vsyncpa [#allocation4], 0  ;;  %s168_s12 = smov [#allocation2]   ;;  %s120_s16 = scalar_lea.hbm %s224_s0, 256 }
   0x2   :  { %s15_s13 = sshll.u32 %s168_s12, 4  ;;  %p121_p0 = scmp.ne.s32.totalorder %s224_s0, %s120_s16  ;;  %s16_s13 = int_to_ptr.vmem [resolvable:$true] %s15_s13 }
   0x3   :  { %p124_p1 = scmp.lt.u32.totalorder %s120_s16, %s224_s0 }
   0x5   :  { %p126_p2 = pnand %p124_p1, %p121_p0 }
   0x7   :  { %129 = shalt.err (!%p126_p2)
}
   0x8   :  { %s130_s21 = scalar_lea.vmem %s16_s13, 256  ;;  %p135_p4 = scmp.lt.s32.totalorder %s16_s13, %s16_s13 }
   0x9   :  { %p131_p3 = scmp.ne.s32.totalorder %s16_s13, %s130_s21  ;;  %p136_p5 = scmp.lt.s32.totalorder %s130_s21, %s130_s21 }
   0xb   :  { %p137_p6 = por %p136_p5, %p135_p4 }
   0xd   :  { %p138_p7 = pnand %p137_p6, %p131_p3 }
   0xf   :  { %141 = shalt.err (!%p138_p7)
}
  0x10   :  { %s169_s22 = smov 128   ;;  %s170_s23 = smov 8  }
  0x11   :  { %21 = dma.hbm_to_vmem [thread:$0]  %s224_s0, 256, %s16_s13, [#allocation3], %s169_s22, %s169_s22, %s170_s23  }
  0x12   :  { %164 = dma.done.wait [#allocation3], 256  }
  0x13   :  { %165 = vsyncadd [#allocation3], 4294967040  ;;  %v29_v0 = vld [vmem:[#allocation2] sm:$0xff]  ;;  %v30_v1 = vld [vmem:[#allocation2 + $0x8] sm:$0xff]  ;;  %s171_s29 = smov [#allocation5]  }
  0x14   :  { %31 = vadd.xlane.f32.xlu0 %v29_v0  ;;  %v99_v18 = vld [vmem:[%s225_s1] ss:$0 sm:$0xff]  ;;  %s87_s30 = sshll.u32 %s171_s29, 4  ;;  %s88_s30 = int_to_ptr.vmem [resolvable:$true] %s87_s30 }
  0x15   :  { %v100_v22 = vld [vmem:[%s226_s2] ss:$0 sm:$0xff]  ;;  %s142_s4 = scalar_lea.vmem %s88_s30, 128  ;;  %p147_p9 = scmp.lt.s32.totalorder %s88_s30, %s88_s30 }
  0x16   :  { %p143_p8 = scmp.ne.s32.totalorder %s88_s30, %s142_s4  ;;  %p148_p10 = scmp.lt.s32.totalorder %s142_s4, %s142_s4 }
  0x18   :  { %33 = vadd.xlane.f32.xlu0 %v30_v1  ;;  %p149_p11 = por %p148_p10, %p147_p9 }
  0x1a   :  { %p150_p12 = pnand %p149_p11, %p143_p8 }
  0xa1   :  { %v32_v2 = vpop.xlane.xlu0 %31 }
  0xa2   :  { %v36_v3 = vmul.f32 0.0078125, %v32_v2 }
  0xa4   :  { %v38_v4 = vsub.f32 %v29_v0, %v36_v3 }
  0xa5   :  { %v34_v5 = vpop.xlane.xlu0 %33 }
  0xa6   :  { %v37_v6 = vmul.f32 0.0078125, %v34_v5  ;;  %v40_v7 = vmul.f32 %v38_v4, %v38_v4 }
  0xa8   :  { %v39_v8 = vsub.f32 %v30_v1, %v37_v6  ;;  %42 = vadd.xlane.f32.xlu1 %v40_v7 }
  0xaa   :  { %v41_v9 = vmul.f32 %v39_v8, %v39_v8 }
  0xac   :  { %44 = vadd.xlane.f32.xlu1 %v41_v9 }
 0x135   :  { %v43_v10 = vpop.xlane.xlu1 %42 }
 0x136   :  { %v46_v11 = vmul.f32 0.0078125, %v43_v10 }
 0x138   :  { %v48_v12 = vadd.f32 1e-12, %v46_v11 }
 0x139   :  { %v45_v13 = vpop.xlane.xlu1 %44 }
 0x13a   :  { %116 = vrsqrt.f32 %v48_v12  ;;  %v47_v14 = vmul.f32 0.0078125, %v45_v13 }
 0x13c   :  { %v49_v15 = vadd.f32 1e-12, %v47_v14 }
 0x13e   :  { %118 = vrsqrt.f32 %v49_v15 }
 0x144   :  { %v117_v16 = vpop.eup %116 }
 0x145   :  { %v52_v17 = vmul.f32 %v117_v16, %v38_v4 }
 0x147   :  { %v61_v21 = vmul.f32 %v99_v18, %v52_v17 }
 0x148   :  { %v119_v19 = vpop.eup %118 }
 0x149   :  { %v53_v20 = vmul.f32 %v119_v19, %v39_v8  ;;  %v70_v24 = vadd.f32 %v100_v22, %v61_v21 }
 0x14b   :  { %v62_v23 = vmul.f32 %v99_v18, %v53_v20 }
 0x14d   :  { %v71_v25 = vadd.f32 %v100_v22, %v62_v23 }
 0x14f   :  { %v108_v26 = vpack.c.bf16 %v71_v25, %v70_v24 }
 0x151   :  { %109 = vst [vmem:[#allocation5] sm:$0xff] %v108_v26  }
 0x152   :  { %153 = shalt.err (!%p150_p12)
}
 0x153   :  { %s154_s6 = scalar_lea.hbm %s227_s3, 128 }
 0x154   :  { %p155_p13 = scmp.ne.s32.totalorder %s227_s3, %s154_s6  ;;  %p158_p0 = scmp.lt.u32.totalorder %s154_s6, %s227_s3 }
 0x156   :  { %p160_p1 = pnand %p158_p0, %p155_p13 }
 0x158   :  { %163 = shalt.err (!%p160_p1)
}
 0x159   :  { %s172_s10 = smov 64   ;;  %s173_s11 = smov 4  }
 0x15a   :  { %93 = dma.vmem_to_hbm [thread:$0]  %s88_s30, 128, %s227_s3, [#allocation4], %s172_s10, %s172_s10, %s173_s11  }
 0x15b   :  { %166 = dma.done.wait [#allocation4], 128  }
 0x15c   :  { %167 = vsyncadd [#allocation4], 4294967168 }
 0x15d   :  { %97 = vsyncpa [#allocation3], 1 }
 0x15e   :  { %98 = vsyncpa [#allocation4], 1 }

</bundles_post_ra>
